<compile_context>
chip_gen: v7x
topology: tpu7x:2x2x1
jax: 0.10.0
libtpu: 0.0.40
codegen_flags: <defaults>
</compile_context>

<pallas_src>
import functools
from typing import NamedTuple

import jax
import jax.numpy as jnp
from jax.experimental import pallas as pl
from jax.experimental.pallas import tpu as pltpu


def _round_up(x: int, m: int) -> int:
    return (x + m - 1) // m * m


def _default_tile_n() -> int:
    """Lane-tile default: big enough to amortize per-grid-step overhead."""
    try:
        kind = jax.devices()[0].device_kind.lower()
    except Exception:  # pragma: no cover - e.g. no devices at trace time
        kind = ""
    if "v7" in kind or "7x" in kind:
        # ~3.2 TB/s HBM -> need ~2x the lane tile to stay near roofline;
        # footprint ~25 MiB, sized against v7x's 64 MiB physical VMEM.
        return 65536
    return 32768  # v5e / v6e (and a safe generic default)


def _choose_tile(n: int, tile_n: int) -> int:
    # Defensive: lane tile must be a multiple of 128 (the (8,128) constraint).
    tile_n = _round_up(max(int(tile_n), 128), 128)
    # Keep >= 2 grid steps when there is enough work, so both v7x TensorCores
    # get a tile (grid axis is "parallel"); harmless on 1-TC chips.
    two_way = _round_up(max(-(-n // 2), 1), 128)
    return min(tile_n, two_way)


class RewardModelParams(NamedTuple):
    """Kernel-ready (pre-relayouted) parameters."""
    w1_t: jax.Array  # (hidden, obs_dim + act_dim), f32 or bf16
    b1:   jax.Array  # (hidden, 1)  f32
    w2:   jax.Array  # (1, hidden)  f32
    b2:   jax.Array  # (1, 1)       f32


def prepare_params(w1, b1, w2, b2, *, compute_dtype=jnp.float32) -> RewardModelParams:
    """One-time weight relayout, hoisted out of the forward hot path.

    w1: (d_in, hidden), b1: (hidden,) or (1, hidden),
    w2: (hidden, 1) or (1, hidden), b2: scalar-like.
    """
    d_in, hidden = w1.shape
    return RewardModelParams(
        w1_t=jnp.asarray(w1, jnp.float32).T.astype(compute_dtype),   # (H, d_in)
        b1=jnp.asarray(b1, jnp.float32).reshape(hidden, 1),
        w2=jnp.asarray(w2, jnp.float32).reshape(1, hidden),
        b2=jnp.asarray(b2, jnp.float32).reshape(1, 1),
    )


def init_params(key, obs_dim: int, action_dim: int, hidden_dim: int,
                *, compute_dtype=jnp.float32) -> RewardModelParams:
    """Deterministic init mimicking nn.Linear defaults (U[-1/sqrt(fan_in), ...])."""
    d_in = obs_dim + action_dim
    k1, k2, k3, k4 = jax.random.split(key, 4)
    bound1 = d_in ** -0.5
    bound2 = hidden_dim ** -0.5
    w1 = jax.random.uniform(k1, (d_in, hidden_dim), jnp.float32, -bound1, bound1)
    b1 = jax.random.uniform(k2, (hidden_dim,), jnp.float32, -bound1, bound1)
    w2 = jax.random.uniform(k3, (hidden_dim, 1), jnp.float32, -bound2, bound2)
    b2 = jax.random.uniform(k4, (1,), jnp.float32, -bound2, bound2)
    return prepare_params(w1, b1, w2, b2, compute_dtype=compute_dtype)


def _reward_kernel(x_ref, w1t_ref, b1_ref, w2_ref, b2_ref, o_ref,
                   *, r_min: float, r_max: float):
    # x_ref:   (d_in, TN)  streamed input block, batch on lanes.  Lanes past N
    #          in the boundary tile are garbage but never mix across lanes and
    #          are discarded on writeback.
    # w1t_ref: (H, d_in)   VMEM-resident (constant index_map)
    # b1_ref:  (H, 1)      VMEM-resident
    # w2_ref:  (1, H)      VMEM-resident
    # b2_ref:  (1, 1)      SMEM scalar
    # o_ref:   (1, TN)     lane-dense output store
    h = jnp.dot(w1t_ref[...], x_ref[...], preferred_element_type=jnp.float32)
    h = h + b1_ref[...]                      # (H, 1) broadcast over lanes
    h = jnp.where(h > 0, h, 0.01 * h)        # LeakyReLU, PyTorch default slope
    z = jnp.dot(w2_ref[...], h, preferred_element_type=jnp.float32) + b2_ref[0, 0]
    y = 1.0 / (1.0 + jnp.exp(-z))            # exact sigmoid (exp on EUP, exact div)
    # Affine rescale to [r_min, r_max]; constants fold at trace time.
    o_ref[...] = (r_min + (r_max - r_min) * y).astype(o_ref.dtype)


def reward_model_apply(x_t, params: RewardModelParams, r_min: float, r_max: float,
                       *, tile_n: int | None = None):
    """Core entry point: feature-major input, zero wrapper copies.

    x_t: (d_in, N) with rows [obs features ; action features].
    Returns (1, N) float32 rewards in [r_min, r_max].
    """
    d_in, n = x_t.shape
    hidden = params.w1_t.shape[0]
    assert params.w1_t.shape == (hidden, d_in), "params/input feature mismatch"

    if tile_n is None:
        tile_n = _default_tile_n()
    tn = _choose_tile(n, tile_n)
    grid = (pl.cdiv(n, tn),)                 # no padding: boundary DMA is masked

    kernel = functools.partial(_reward_kernel, r_min=float(r_min), r_max=float(r_max))

    compiler_params = pltpu.CompilerParams(
        dimension_semantics=("parallel",),   # shard lane tiles over TCs (v7x)
        # Big v7x tiles (~65536 lanes) push the per-step footprint past the
        # 32 MiB default scoped VMEM; 48 MiB still fits v7x's 64 MiB physical.
        vmem_limit_bytes=(48 * 1024 * 1024) if tn > 32768 else None,
    )

    out = pl.pallas_call(
        kernel,
        out_shape=jax.ShapeDtypeStruct((1, n), jnp.float32),
        grid=grid,
        in_specs=[
            pl.BlockSpec((d_in, tn), lambda i: (0, i)),          # streamed input
            pl.BlockSpec((hidden, d_in), lambda i: (0, 0)),      # resident W1^T
            pl.BlockSpec((hidden, 1), lambda i: (0, 0)),         # resident b1
            pl.BlockSpec((1, hidden), lambda i: (0, 0)),         # resident w2
            pl.BlockSpec(memory_space=pltpu.MemorySpace.SMEM),   # b2 scalar
        ],
        out_specs=pl.BlockSpec((1, tn), lambda i: (0, i)),       # lane-dense store
        compiler_params=compiler_params,
    )(x_t, params.w1_t, params.b1, params.w2, params.b2)
    return out  # (1, N)


def reward_model_forward(obs, action, params: RewardModelParams,
                         r_min: float, r_max: float, *, tile_n: int | None = None):
    """PyTorch-compatible forward.

    obs:    (N, obs_dim) or (B, T, obs_dim)
    action: (N, act_dim) or (B, T, act_dim)
    Returns (N, 1) for 2-D inputs, (B, T) for 3-D inputs.

    Does exactly ONE fused cast+concat+transpose copy (no pad).  Producers that
    can emit feature-major (d_in, N) inputs should call reward_model_apply()
    directly for a zero-copy path.
    """
    obs_dim = obs.shape[-1]
    act_dim = action.shape[-1]

    needs_reshape = obs.ndim == 3
    if needs_reshape:
        B, T = obs.shape[:2]
        assert action.ndim == 3 and action.shape[:2] == (B, T)
        obs = obs.reshape(-1, obs_dim)
        action = action.reshape(-1, act_dim)
    else:
        assert action.ndim == 2 and action.shape[0] == obs.shape[0]
    n = obs.shape[0]

    # Single fused relayout: cast + concat + transpose in one XLA copy, no pad.
    dtype = params.w1_t.dtype
    x_t = jnp.concatenate((obs.astype(dtype).T, action.astype(dtype).T), axis=0)

    out = reward_model_apply(x_t, params, r_min, r_max, tile_n=tile_n)  # (1, N)
    if needs_reshape:
        return out.reshape(B, T)
    return out.reshape(n, 1)


def _reference(obs2d, act2d, params: RewardModelParams, r_min, r_max):
    """Pure-JAX reference mirroring the PyTorch module (f32)."""
    x = jnp.concatenate((obs2d, act2d), -1).astype(jnp.float32)
    w1 = params.w1_t.astype(jnp.float32).T            # (d_in, H)
    h = x @ w1 + params.b1.reshape(1, -1)
    h = jnp.where(h > 0, h, 0.01 * h)
    z = h @ params.w2.reshape(-1, 1) + params.b2.reshape(1, 1)
    y = 1.0 / (1.0 + jnp.exp(-z))
    return r_min + (r_max - r_min) * y                 # (N, 1)


if __name__ == "__main__":
    obs_dim, action_dim, hidden_dim = 12, 4, 32
    r_min, r_max = -1.0, 1.0
    B, T = 2, 8

    key = jax.random.PRNGKey(0)
    kp, ko, ka, ko2, ka2 = jax.random.split(key, 5)
    params = init_params(kp, obs_dim, action_dim, hidden_dim)      # hoisted weight prep

    # 3-D (trajectory) inputs -> output (B, T)
    obs = jax.random.normal(ko, (B, T, obs_dim), jnp.float32)
    action = jax.random.normal(ka, (B, T, action_dim), jnp.float32)
    rewards = jax.block_until_ready(reward_model_forward(obs, action, params, r_min, r_max))
    assert rewards.shape == (B, T)
    ref = _reference(obs.reshape(-1, obs_dim), action.reshape(-1, action_dim),
                     params, r_min, r_max).reshape(B, T)
    # atol covers possible MXU default-precision differences vs the XLA reference
    assert jnp.allclose(rewards, ref, atol=2e-3), "mismatch vs reference (3-D path)"

    # 2-D input path -> output (N, 1)
    r2 = jax.block_until_ready(reward_model_forward(obs[0], action[0], params, r_min, r_max))
    assert r2.shape == (T, 1)
    ref2 = _reference(obs[0], action[0], params, r_min, r_max)
    assert jnp.allclose(r2, ref2, atol=2e-3), "mismatch vs reference (2-D path)"

    # Multi-tile grid + masked boundary tile: n=600, tile_n=128 -> grid=(5,)
    obs_big = jax.random.normal(ko2, (600, obs_dim), jnp.float32)
    act_big = jax.random.normal(ka2, (600, action_dim), jnp.float32)
    r3 = jax.block_until_ready(
        reward_model_forward(obs_big, act_big, params, r_min, r_max, tile_n=128))
    assert r3.shape == (600, 1)
    ref3 = _reference(obs_big, act_big, params, r_min, r_max)
    assert jnp.allclose(r3, ref3, atol=2e-3), "mismatch vs reference (tiled path)"

    # Zero-copy entry point: a producer emitting feature-major (d_in, N) inputs
    # skips the wrapper relayout entirely (built with a transpose here only for
    # the demo).
    x_t = jnp.concatenate((obs_big.T, act_big.T), axis=0)
    r4 = jax.block_until_ready(reward_model_apply(x_t, params, r_min, r_max))
    assert r4.shape == (1, 600)
    assert jnp.allclose(r4.reshape(600, 1), ref3, atol=2e-3), "mismatch (feature-major path)"

    # Optional bf16-input path: halves input HBM bytes, f32 accumulation.
    params_bf16 = init_params(kp, obs_dim, action_dim, hidden_dim,
                              compute_dtype=jnp.bfloat16)
    r5 = jax.block_until_ready(
        reward_model_forward(obs_big, act_big, params_bf16, r_min, r_max))
    assert r5.shape == (600, 1)
    assert jnp.allclose(r5, ref3, atol=5e-2), "mismatch vs reference (bf16 path)"

    print("KERNEL_OK")
</pallas_src>

<mosaic_0001>
module attributes {stable_mosaic.version = 11 : i64} {
  func.func @_reward_kernel(%arg0: i32, %arg1: memref<16x128xf32, #tpu.memory_space<vmem>>, %arg2: memref<32x16xf32, #tpu.memory_space<vmem>>, %arg3: memref<32x1xf32, #tpu.memory_space<vmem>>, %arg4: memref<1x32xf32, #tpu.memory_space<vmem>>, %arg5: memref<1x1xf32, #tpu.memory_space<smem>>, %arg6: memref<1x128xf32, #tpu.memory_space<vmem>>) attributes {dimension_semantics = [#tpu.dimension_semantics<parallel>], iteration_bounds = array<i64: 1>, scalar_prefetch = 0 : i64, scratch_operands = 0 : i64, tpu.core_type = #tpu.core_type<tc>, window_params = [{transform_indices = @transform_0, window_bounds = array<i64: 16, 128>}, {pipeline_mode = #tpu.pipeline_mode<synchronous>, transform_indices = @transform_1, window_bounds = array<i64: 32, 16>}, {pipeline_mode = #tpu.pipeline_mode<synchronous>, transform_indices = @transform_2, window_bounds = array<i64: 32, 1>}, {pipeline_mode = #tpu.pipeline_mode<synchronous>, transform_indices = @transform_3, window_bounds = array<i64: 1, 32>}, {transform_indices = @transform_4, window_bounds = array<i64: 1, 1>}, {transform_indices = @transform_5, window_bounds = array<i64: 1, 128>}]} {
    %c0 = arith.constant 0 : index
    %c0_0 = arith.constant 0 : index
    %0 = vector.load %arg2[%c0, %c0_0] : memref<32x16xf32, #tpu.memory_space<vmem>>, vector<32x16xf32>
    %c0_1 = arith.constant 0 : index
    %c0_2 = arith.constant 0 : index
    %1 = vector.load %arg1[%c0_1, %c0_2] : memref<16x128xf32, #tpu.memory_space<vmem>>, vector<16x128xf32>
    %cst = arith.constant dense<0.000000e+00> : vector<32x128xf32>
    %2 = tpu.matmul %0, %1, %cst {dimension_numbers = #tpu.dot_dimension_numbers<[1], [0], [0], [1], [0, 0, 1, 1], [], []>} : vector<32x16xf32>, vector<16x128xf32>, vector<32x128xf32> -> vector<32x128xf32>
    %c0_3 = arith.constant 0 : index
    %c0_4 = arith.constant 0 : index
    %3 = vector.load %arg3[%c0_3, %c0_4] : memref<32x1xf32, #tpu.memory_space<vmem>>, vector<32x1xf32>
    %4 = vector.broadcast %3 : vector<32x1xf32> to vector<32x128xf32>
    %5 = arith.addf %2, %4 : vector<32x128xf32>
    %cst_5 = arith.constant 0.000000e+00 : f32
    %6 = vector.broadcast %cst_5 : f32 to vector<32x128xf32>
    %7 = arith.cmpf ogt, %5, %6 : vector<32x128xf32>
    %cst_6 = arith.constant 0.00999999977 : f32
    %8 = vector.broadcast %cst_6 : f32 to vector<32x128xf32>
    %9 = arith.mulf %8, %5 : vector<32x128xf32>
    %10 = arith.select %7, %5, %9 : vector<32x128xi1>, vector<32x128xf32>
    %c0_7 = arith.constant 0 : index
    %c0_8 = arith.constant 0 : index
    %11 = vector.load %arg4[%c0_7, %c0_8] : memref<1x32xf32, #tpu.memory_space<vmem>>, vector<1x32xf32>
    %cst_9 = arith.constant dense<0.000000e+00> : vector<1x128xf32>
    %12 = tpu.matmul %11, %10, %cst_9 {dimension_numbers = #tpu.dot_dimension_numbers<[1], [0], [0], [1], [0, 0, 1, 1], [], []>} : vector<1x32xf32>, vector<32x128xf32>, vector<1x128xf32> -> vector<1x128xf32>
    %c0_10 = arith.constant 0 : index
    %c0_11 = arith.constant 0 : index
    %13 = memref.load %arg5[%c0_10, %c0_11] : memref<1x1xf32, #tpu.memory_space<smem>>
    %14 = vector.broadcast %13 : f32 to vector<1x128xf32>
    %15 = arith.addf %12, %14 : vector<1x128xf32>
    %cst_12 = arith.constant 0.000000e+00 : f32
    %16 = vector.broadcast %cst_12 : f32 to vector<1x128xf32>
    %17 = arith.subf %16, %15 : vector<1x128xf32>
    %18 = math.exp %17 : vector<1x128xf32>
    %cst_13 = arith.constant 1.000000e+00 : f32
    %19 = vector.broadcast %cst_13 : f32 to vector<1x128xf32>
    %20 = arith.addf %19, %18 : vector<1x128xf32>
    %cst_14 = arith.constant 1.000000e+00 : f32
    %21 = vector.broadcast %cst_14 : f32 to vector<1x128xf32>
    %22 = arith.divf %21, %20 : vector<1x128xf32>
    %cst_15 = arith.constant 2.000000e+00 : f32
    %23 = vector.broadcast %cst_15 : f32 to vector<1x128xf32>
    %24 = arith.mulf %23, %22 : vector<1x128xf32>
    %cst_16 = arith.constant -1.000000e+00 : f32
    %25 = vector.broadcast %cst_16 : f32 to vector<1x128xf32>
    %26 = arith.addf %25, %24 : vector<1x128xf32>
    %c0_17 = arith.constant 0 : index
    %c0_18 = arith.constant 0 : index
    %27 = vector.load %arg6[%c0_17, %c0_18] : memref<1x128xf32, #tpu.memory_space<vmem>>, vector<1x128xf32>
    tpu.vector_store %arg6[%c0_17, %c0_18], %26 {strides = array<i32>} : memref<1x128xf32, #tpu.memory_space<vmem>>, vector<1x128xf32>,
    return
  }
  func.func @transform_0(%arg0: i32) -> (i32, i32) {
    %c0_i32 = arith.constant 0 : i32
    %c0_i32_0 = arith.constant 0 : i32
    return %c0_i32, %arg0 : i32, i32
  }
  func.func @transform_1(%arg0: i32) -> (i32, i32) {
    %c0_i32 = arith.constant 0 : i32
    %c0_i32_0 = arith.constant 0 : i32
    %c0_i32_1 = arith.constant 0 : i32
    return %c0_i32, %c0_i32_0 : i32, i32
  }
  func.func @transform_2(%arg0: i32) -> (i32, i32) {
    %c0_i32 = arith.constant 0 : i32
    %c0_i32_0 = arith.constant 0 : i32
    %c0_i32_1 = arith.constant 0 : i32
    return %c0_i32, %c0_i32_0 : i32, i32
  }
  func.func @transform_3(%arg0: i32) -> (i32, i32) {
    %c0_i32 = arith.constant 0 : i32
    %c0_i32_0 = arith.constant 0 : i32
    %c0_i32_1 = arith.constant 0 : i32
    return %c0_i32, %c0_i32_0 : i32, i32
  }
  func.func @transform_4(%arg0: i32) -> (i32, i32) {
    %c0_i32 = arith.constant 0 : i32
    %c0_i32_0 = arith.constant 0 : i32
    %c0_i32_1 = arith.constant 0 : i32
    return %c0_i32, %c0_i32_0 : i32, i32
  }
  func.func @transform_5(%arg0: i32) -> (i32, i32) {
    %c0_i32 = arith.constant 0 : i32
    %c0_i32_0 = arith.constant 0 : i32
    return %c0_i32, %arg0 : i32, i32
  }
}

</mosaic_0001>

<bundles_post_ra>
// kernel: tpu_custom_call.1
= control target key start
LH: loop header
LB: loop body
LE: loop exit
PB: predicated region body
PF: predicated region fallthrough
CT: control target
= control target key end

     0   :  { %vm52_vm0 = vcmask 130048   ;;  %v344_v4 = vmov 0   ;;  %s431_s0 = inlined_call_operand.vmem [shape: f32[16,16], index: 0, kind: input, shape index: {}]   ;;  %s432_s1 = inlined_call_operand.vmem [shape: f32[32,16], index: 1, kind: input, shape index: {}]   ;;  %s433_s2 = inlined_call_operand.vmem [shape: f32[32,1], index: 2, kind: input, shape index: {}]   ;;  %s434_s3 = inlined_call_operand.vmem [shape: f32[1,32], index: 3, kind: input, shape index: {}]   ;;  %s435_s4 = inlined_call_operand.<no memory space> [shape: f32[1,1], index: 4, kind: input, shape index: {}]   ;;  %s436_s5 = inlined_call_operand.hbm [shape: f32[1,16], index: 5, kind: output, shape index: {}]  }
   0x1   :  { %v26_v0 = vld [vmem:[%s431_s0] sm:$0xff]  ;;  %v27_v1 = vld [vmem:[%s431_s0 + $0x8] sm:$0xff]  ;;  %314 = vset.pattern.permute.xlu0 %v344_v4  ;;  %315 = vset.pattern.permute.xlu1 %v344_v4  ;;  %v30_v6 = vld [vmem:[%s433_s2 + $0x10] sm:$0xff] }
   0x2   :  { %v22_v2 = vld [vmem:[%s432_s1] sm:$0xff]  ;;  %v299_v3 = vpack.c.bf16 %v27_v1, %v26_v0 }
   0x3   :  { %282 = vmatprep.mubr.msk.f32.mxu0 %vm52_vm0, %v22_v2  ;;  %v28_v5 = vld [vmem:[%s433_s2] sm:$0xff] }
   0x4   :  { %300 = vmatprep.subr.bf16.mxu0 %v299_v3  ;;  %34 = vperm.xlu0 %314, %v28_v5  }
   0x5   :  { %11 = vsyncpa [#allocation4], 0  ;;  %302 = vmatpush3.bf16.msra.mxu0 %v299_v3  ;;  %v23_v7 = vld [vmem:[%s432_s1 + $0x8] sm:$0xff]  ;;  %44 = vperm.xlu1 %315, %v30_v6   ;;  %v24_v9 = vld [vmem:[%s432_s1 + $0x10] sm:$0xff]  ;;  %v345_v12 = vmov 0.0|0.0   ;;  %vm346_vm1 = vmmov 0   ;;  %v164_v37 = vstv %s435_s4 }
   0x6   :  { %v29_v8 = vld [vmem:[%s433_s2 + $0x8] sm:$0xff]  ;;  %v31_v10 = vld [vmem:[%s433_s2 + $0x18] sm:$0xff]  ;;  %303 = vmatprep.subr.bf16.mxu1 %v345_v12  ;;  %v347_v13 = vmov 0.0   ;;  %v162_v36 = vld [vmem:[%s434_s3] sm:$0x1]  ;;  %vm165_vm6 = vcmask 261120  }
   0x7   :  { %v25_v11 = vld [vmem:[%s432_s1 + $0x18] sm:$0xff]  ;;  %296 = vmatprep.mubr.msk.f32.mxu1 %vm346_vm1, %v347_v13  ;;  %s348_s14 = smov [#allocation3]  }
   0x8   :  { %283 = vmatmul.mubr.msk.f32.vlgmr.msra.gmra.mrb[0].mxu0 %vm52_vm0, %v23_v7  ;;  %39 = vperm.xlu0 %314, %v29_v8   ;;  %s254_s15 = sshll.u32 %s348_s14, 4  ;;  %s255_s15 = int_to_ptr.vmem [resolvable:$true] %s254_s15 }
   0x9   :  { %285 = vmatprep.mubr.msk.f32.mxu0 %vm52_vm0, %v24_v9  ;;  %49 = vperm.xlu1 %315, %v31_v10   ;;  %s320_s3 = scalar_lea.vmem %s255_s15, 16  ;;  %s324_s16 = scalar_lea.vmem %s255_s15, 32 }
   0xa   :  { %p321_p0 = scmp.ne.s32.totalorder %s255_s15, %s320_s3  ;;  %p325_p1 = scmp.lt.s32.totalorder %s255_s15, %s255_s15 }
   0xb   :  { %p326_p2 = scmp.lt.s32.totalorder %s324_s16, %s320_s3 }
   0xc   :  { %286 = vmatmul.mubr.msk.f32.gmra.mrb[2].mxu0 %vm52_vm0, %v25_v11 }
   0xd   :  { %p327_p3 = por %p326_p2, %p325_p1 }
   0xf   :  { %p328_p4 = pnand %p327_p3, %p321_p0 }
  0x83   :  { %v35_v14 = vpop.permute.xlu0 %34 }
  0x84   :  { %v45_v15 = vpop.permute.xlu1 %44 }
  0x87   :  { %v40_v16 = vpop.permute.xlu0 %39 }
  0x88   :  { %v50_v22 = vpop.permute.xlu1 %49 }
  0xdb   :  { %v284_v17 = vpop.f32.mrb[0].mxu0 }
  0xdc   :  { %v137_v18 = vadd.f32 %v284_v17, %v40_v16  ;;  %v131_v19 = vpop.f32.mrb[1].mxu0 }
  0xdd   :  { %v132_v20 = vadd.f32 %v131_v19, %v35_v14 }
  0xde   :  { %v155_v21 = vmul.f32 0.01, %v137_v18  ;;  %vm151_vm2 = vcmp.gt.f32.partialorder %v137_v18, 0.0 }
  0xdf   :  { %v154_v23 = vmul.f32 0.01, %v132_v20  ;;  %v287_v24 = vpop.f32.mrb[2].mxu0  ;;  %vm150_vm3 = vcmp.gt.f32.partialorder %v132_v20, 0.0 }
  0xe0   :  { %v147_v25 = vadd.f32 %v287_v24, %v50_v22  ;;  %v141_v26 = vpop.f32.mrb[3].mxu0  ;;  %v159_v27 = vsel %vm151_vm2, %v137_v18, %v155_v21 }
  0xe1   :  { %v142_v28 = vadd.f32 %v141_v26, %v45_v15  ;;  %v158_v29 = vsel %vm150_vm3, %v132_v20, %v154_v23 }
  0xe2   :  { %vm153_vm4 = vcmp.gt.f32.partialorder %v147_v25, 0.0  ;;  %v157_v30 = vmul.f32 0.01, %v147_v25  ;;  %v304_v31 = vpack.c.bf16 %v159_v27, %v158_v29 }
  0xe3   :  { %vm152_vm5 = vcmp.gt.f32.partialorder %v142_v28, 0.0  ;;  %v156_v32 = vmul.f32 0.01, %v142_v28 }
  0xe4   :  { %305 = vmatpush3.bf16.msra.mxu1 %v304_v31  ;;  %v161_v33 = vsel %vm153_vm4, %v147_v25, %v157_v30 }
  0xe5   :  { %306 = vmatprep.subr.bf16.mxu1 %v345_v12  ;;  %v160_v34 = vsel %vm152_vm5, %v142_v28, %v156_v32 }
  0xe6   :  { %v307_v35 = vpack.c.bf16 %v161_v33, %v160_v34 }
  0xe8   :  { %308 = vmatpush3.bf16.msra.mxu1 %v307_v35 }
  0xeb   :  { %297 = vmatmul.mubr.msk.f32.vlgmr.msra.gmra.mrb[0].mxu1 %vm165_vm6, %v162_v36 }
 0x1be   :  { %v235_v38 = vpop.f32.mrb[0].mxu1 }
 0x1bf   :  { %v236_v39 = vadd.f32 %v235_v38, %v164_v37  ;;  %v298_v40 = vpop.f32.mrb[1].mxu1 }
 0x1c1   :  { %v239_v41 = vsub.f32 0.0, %v236_v39 }
 0x1c3   :  { %v240_v42 = vmul.f32 1.442695, %v239_v41 }
 0x1c5   :  { %316 = vpow2.f32 %v240_v42 }
 0x1cf   :  { %v317_v43 = vpop.eup %316 }
 0x1d0   :  { %v242_v44 = vadd.f32 1.0, %v317_v43 }
 0x1d2   :  { %318 = vrcp.f32 %v242_v44 }
 0x1dc   :  { %v319_v45 = vpop.eup %318 }
 0x1dd   :  { %v245_v46 = vmul.f32 2.0, %v319_v45 }
 0x1df   :  { %v246_v47 = vadd.f32 -1.0, %v245_v46 }
 0x1e1   :  { %247 = vst [vmem:[#allocation3] sm:$0x1] %v246_v47 }
 0x1e2   :  { %331 = shalt.err (!%p328_p4)
}
 0x1e3   :  { %s332_s18 = scalar_lea.hbm %s436_s5, 16 }
 0x1e4   :  { %p333_p5 = scmp.ne.s32.totalorder %s436_s5, %s332_s18  ;;  %p336_p6 = scmp.lt.u32.totalorder %s332_s18, %s436_s5 }
 0x1e6   :  { %p338_p7 = pnand %p336_p6, %p333_p5 }
 0x1e8   :  { %341 = shalt.err (!%p338_p7)
}
 0x1e9   :  { %257 = dma.vmem_to_hbm [thread:$0]  %s255_s15, 16, %s436_s5, [#allocation4]  }
 0x1ea   :  { %342 = dma.done.wait [#allocation4], 16  }
 0x1eb   :  { %343 = vsyncadd [#allocation4], 4294967280 }
 0x1ec   :  { %261 = vsyncpa [#allocation4], 1 }

</bundles_post_ra>
